<compile_context>
chip_gen: v7x
topology: tpu7x:2x2x1
jax: 0.10.0
libtpu: 0.0.40
codegen_flags: <defaults>
</compile_context>

<pallas_src>
import jax
import jax.numpy as jnp
from jax.experimental import pallas as pl
from jax.experimental.pallas import tpu as pltpu


# ------------------------------------------------------------------ kernel ---
def _policy_kernel(x_ref, w1_ref, w2_ref, w3_ref, b_ref, out_ref):
    x = x_ref[...]

    # Fused layer 1: [TB, S] @ [S, 128] -> (actor hidden | critic hidden).
    h = jnp.tanh(
        jnp.dot(x, w1_ref[...], preferred_element_type=jnp.float32)
        + b_ref[0:1, :]
    )
    # Fused layer 2: block-diagonal [128, 128]; no actor/critic cross-talk.
    h = jnp.tanh(
        jnp.dot(h, w2_ref[...], preferred_element_type=jnp.float32)
        + b_ref[1:2, :]
    )
    # Fused layer 3: lane-dense [TB, 128] output slab
    # (mean in lanes 0..A-1, critic estimate in lane A, zeros elsewhere).
    out_ref[...] = (
        jnp.dot(h, w3_ref[...], preferred_element_type=jnp.float32)
        + b_ref[2:3, :]
    )


# ----------------------------------------------------------------- wrapper ---
def _round_up(n, m):
    return ((n + m - 1) // m) * m


def policy_forward(x, packed):
    """x: [B, state_space] float32. packed: dict from pack_params().

    Returns (action_mean [B, A], sigma [A], estimate [B, 1])."""
    x = jnp.asarray(x, jnp.float32)
    B, S = x.shape
    w1, w2, w3, biases = packed["w1"], packed["w2"], packed["w3"], packed["b"]
    H2 = w1.shape[1]          # fused hidden width (2 * 64 = 128)
    OUT_W = w3.shape[1]       # lane-dense output width (128)
    A = packed["action_space"]

    # Batch tiling: single block for small B, 512-row tiles for rollout
    # batches (512x128 f32 block = 256 KiB; double-buffered inputs + outputs
    # stay well inside the default scoped-VMEM limit on v5e/v6e/v7x).
    TB = 512 if B > 512 else _round_up(max(B, 1), 8)
    Bp = _round_up(B, TB)
    x_p = jnp.pad(x, ((0, Bp - B), (0, 0))) if Bp != B else x
    grid = (Bp // TB,)

    flops = 2 * Bp * (S * H2 + H2 * H2 + H2 * OUT_W)
    transcendentals = 2 * Bp * H2  # tanh activations
    bytes_accessed = 4 * (
        Bp * S + S * H2 + H2 * H2 + H2 * OUT_W + 3 * OUT_W + Bp * OUT_W
    )

    out = pl.pallas_call(
        _policy_kernel,
        out_shape=jax.ShapeDtypeStruct((Bp, OUT_W), jnp.float32),
        grid=grid,
        in_specs=[
            pl.BlockSpec((TB, S), lambda i: (i, 0)),       # x tile
            pl.BlockSpec((S, H2), lambda i: (0, 0)),       # fused W1 (resident)
            pl.BlockSpec((H2, H2), lambda i: (0, 0)),      # fused W2 (resident)
            pl.BlockSpec((H2, OUT_W), lambda i: (0, 0)),   # fused W3 (resident)
            pl.BlockSpec((3, OUT_W), lambda i: (0, 0)),    # packed biases
        ],
        out_specs=pl.BlockSpec((TB, OUT_W), lambda i: (i, 0)),
        compiler_params=pltpu.CompilerParams(
            dimension_semantics=("parallel",),
        ),
        cost_estimate=pl.CostEstimate(
            flops=flops,
            transcendentals=transcendentals,
            bytes_accessed=bytes_accessed,
        ),
    )(x_p, w1, w2, w3, biases)

    action_mean = out[:B, :A]
    estimate = out[:B, A:A + 1]
    # sigma is x-independent -> computed in plain JAX, outside the kernel.
    sigma = jax.nn.softplus(packed["sigma_raw"])[0]
    return action_mean, sigma, estimate


# ------------------------------------------------------------------ params ---
def init_params(key, state_space, action_space, hidden=64):
    """Mirrors Policy.init_weights(): normal(0,1) weights, zero biases,
    sigma initialized to 0.5. Weights stored [in, out] (= torch W.T)."""
    ks = jax.random.split(key, 6)

    def lin(k, fan_in, fan_out):
        w = jax.random.normal(k, (fan_in, fan_out), dtype=jnp.float32)
        b = jnp.zeros((1, fan_out), dtype=jnp.float32)
        return w, b

    w1a, b1a = lin(ks[0], state_space, hidden)
    w2a, b2a = lin(ks[1], hidden, hidden)
    w3a, b3a = lin(ks[2], hidden, action_space)
    w1c, b1c = lin(ks[3], state_space, hidden)
    w2c, b2c = lin(ks[4], hidden, hidden)
    w3c, b3c = lin(ks[5], hidden, 1)
    sigma = jnp.full((1, action_space), 0.5, dtype=jnp.float32)

    return dict(
        w1a=w1a, b1a=b1a, w2a=w2a, b2a=b2a, w3a=w3a, b3a=b3a, sigma=sigma,
        w1c=w1c, b1c=b1c, w2c=w2c, b2c=b2c, w3c=w3c, b3c=b3c,
    )


def pack_params(p):
    """Fuse actor+critic weights into 3 wide matrices + one bias slab.
    Done once per parameter set, outside the kernel."""
    S, H = p["w1a"].shape
    A = p["w3a"].shape[1]
    H2 = 2 * H
    assert H2 == 128, "packing assumes hidden=64 (fused hidden width 128)"
    assert A + 1 <= 128, "action_space+1 must fit in one 128-lane output slab"
    OUT_W = 128

    # Layer 1: actor | critic side-by-side on the output (lane) dim.
    w1 = jnp.concatenate([p["w1a"], p["w1c"]], axis=1)          # [S, 128]
    b1 = jnp.concatenate([p["b1a"], p["b1c"]], axis=1)          # [1, 128]

    # Layer 2: block-diagonal so the branches stay independent.
    w2 = jnp.zeros((H2, H2), jnp.float32)
    w2 = w2.at[:H, :H].set(p["w2a"])
    w2 = w2.at[H:, H:].set(p["w2c"])                            # [128, 128]
    b2 = jnp.concatenate([p["b2a"], p["b2c"]], axis=1)          # [1, 128]

    # Layer 3: actor-mean -> lanes 0..A-1, critic estimate -> lane A.
    w3 = jnp.zeros((H2, OUT_W), jnp.float32)
    w3 = w3.at[:H, :A].set(p["w3a"])
    w3 = w3.at[H:, A:A + 1].set(p["w3c"])                       # [128, 128]
    b3 = jnp.zeros((1, OUT_W), jnp.float32)
    b3 = b3.at[:, :A].set(p["b3a"])
    b3 = b3.at[:, A:A + 1].set(p["b3c"])                        # [1, 128]

    biases = jnp.concatenate([b1, b2, b3], axis=0)              # [3, 128]

    return dict(w1=w1, w2=w2, w3=w3, b=biases,
                sigma_raw=p["sigma"], action_space=A)


# --------------------------------------------------------------- reference ---
def _reference_forward(x, p):
    h = jnp.tanh(x @ p["w1a"] + p["b1a"])
    h = jnp.tanh(h @ p["w2a"] + p["b2a"])
    mean = h @ p["w3a"] + p["b3a"]
    sigma = jax.nn.softplus(p["sigma"])[0]
    c = jnp.tanh(x @ p["w1c"] + p["b1c"])
    c = jnp.tanh(c @ p["w2c"] + p["b2c"])
    est = c @ p["w3c"] + p["b3c"]
    return mean, sigma, est


if __name__ == "__main__":
    key = jax.random.PRNGKey(0)
    k_param, k_x = jax.random.split(key)

    batch = 2
    state_space = 8
    action_space = 3

    raw = init_params(k_param, state_space, action_space, hidden=64)
    packed = pack_params(raw)
    x = jax.random.normal(k_x, (batch, state_space), dtype=jnp.float32)

    mean, sigma, est = jax.block_until_ready(policy_forward(x, packed))

    # Sanity check against a plain-JAX reference of the same math.
    ref_mean, ref_sigma, ref_est = _reference_forward(x, raw)
    assert mean.shape == (batch, action_space)
    assert sigma.shape == (action_space,)
    assert est.shape == (batch, 1)
    assert jnp.allclose(mean, ref_mean, atol=1e-4, rtol=1e-4)
    assert jnp.allclose(sigma, ref_sigma, atol=1e-5, rtol=1e-5)
    assert jnp.allclose(est, ref_est, atol=1e-4, rtol=1e-4)

    # TODO(synk): torch.distributions.Normal has no Pallas/JAX equivalent; the
    # kernel returns its parameters (action_mean, sigma) instead.
    print("KERNEL_OK")
</pallas_src>

<mosaic_0001>
module attributes {stable_mosaic.version = 11 : i64} {
  func.func @_policy_kernel(%arg0: i32, %arg1: memref<8x8xf32, #tpu.memory_space<vmem>>, %arg2: memref<8x128xf32, #tpu.memory_space<vmem>>, %arg3: memref<128x128xf32, #tpu.memory_space<vmem>>, %arg4: memref<128x128xf32, #tpu.memory_space<vmem>>, %arg5: memref<3x128xf32, #tpu.memory_space<vmem>>, %arg6: memref<8x128xf32, #tpu.memory_space<vmem>>) attributes {dimension_semantics = [#tpu.dimension_semantics<parallel>], iteration_bounds = array<i64: 1>, scalar_prefetch = 0 : i64, scratch_operands = 0 : i64, tpu.core_type = #tpu.core_type<tc>, window_params = [{transform_indices = @transform_0, window_bounds = array<i64: 8, 8>}, {pipeline_mode = #tpu.pipeline_mode<synchronous>, transform_indices = @transform_1, window_bounds = array<i64: 8, 128>}, {pipeline_mode = #tpu.pipeline_mode<synchronous>, transform_indices = @transform_2, window_bounds = array<i64: 128, 128>}, {pipeline_mode = #tpu.pipeline_mode<synchronous>, transform_indices = @transform_3, window_bounds = array<i64: 128, 128>}, {pipeline_mode = #tpu.pipeline_mode<synchronous>, transform_indices = @transform_4, window_bounds = array<i64: 3, 128>}, {transform_indices = @transform_5, window_bounds = array<i64: 8, 128>}]} {
    %c0 = arith.constant 0 : index
    %c0_0 = arith.constant 0 : index
    %0 = vector.load %arg1[%c0, %c0_0] : memref<8x8xf32, #tpu.memory_space<vmem>>, vector<8x8xf32>
    %c0_1 = arith.constant 0 : index
    %c0_2 = arith.constant 0 : index
    %1 = vector.load %arg2[%c0_1, %c0_2] : memref<8x128xf32, #tpu.memory_space<vmem>>, vector<8x128xf32>
    %cst = arith.constant dense<0.000000e+00> : vector<8x128xf32>
    %2 = tpu.matmul %0, %1, %cst {dimension_numbers = #tpu.dot_dimension_numbers<[1], [0], [0], [1], [0, 0, 1, 1], [], []>} : vector<8x8xf32>, vector<8x128xf32>, vector<8x128xf32> -> vector<8x128xf32>
    %c0_3 = arith.constant 0 : index
    %c0_4 = arith.constant 0 : index
    %3 = vector.load %arg5[%c0_3, %c0_4] : memref<3x128xf32, #tpu.memory_space<vmem>>, vector<1x128xf32>
    %4 = vector.broadcast %3 : vector<1x128xf32> to vector<8x128xf32>
    %5 = arith.addf %2, %4 : vector<8x128xf32>
    %6 = math.tanh %5 : vector<8x128xf32>
    %c0_5 = arith.constant 0 : index
    %c0_6 = arith.constant 0 : index
    %7 = vector.load %arg3[%c0_5, %c0_6] : memref<128x128xf32, #tpu.memory_space<vmem>>, vector<128x128xf32>
    %cst_7 = arith.constant dense<0.000000e+00> : vector<8x128xf32>
    %8 = tpu.matmul %6, %7, %cst_7 {dimension_numbers = #tpu.dot_dimension_numbers<[1], [0], [0], [1], [0, 0, 1, 1], [], []>} : vector<8x128xf32>, vector<128x128xf32>, vector<8x128xf32> -> vector<8x128xf32>
    %c1 = arith.constant 1 : index
    %c0_8 = arith.constant 0 : index
    %9 = vector.load %arg5[%c1, %c0_8] : memref<3x128xf32, #tpu.memory_space<vmem>>, vector<1x128xf32>
    %10 = vector.broadcast %9 : vector<1x128xf32> to vector<8x128xf32>
    %11 = arith.addf %8, %10 : vector<8x128xf32>
    %12 = math.tanh %11 : vector<8x128xf32>
    %c0_9 = arith.constant 0 : index
    %c0_10 = arith.constant 0 : index
    %13 = vector.load %arg4[%c0_9, %c0_10] : memref<128x128xf32, #tpu.memory_space<vmem>>, vector<128x128xf32>
    %cst_11 = arith.constant dense<0.000000e+00> : vector<8x128xf32>
    %14 = tpu.matmul %12, %13, %cst_11 {dimension_numbers = #tpu.dot_dimension_numbers<[1], [0], [0], [1], [0, 0, 1, 1], [], []>} : vector<8x128xf32>, vector<128x128xf32>, vector<8x128xf32> -> vector<8x128xf32>
    %c2 = arith.constant 2 : index
    %c0_12 = arith.constant 0 : index
    %15 = vector.load %arg5[%c2, %c0_12] : memref<3x128xf32, #tpu.memory_space<vmem>>, vector<1x128xf32>
    %16 = vector.broadcast %15 : vector<1x128xf32> to vector<8x128xf32>
    %17 = arith.addf %14, %16 : vector<8x128xf32>
    %c0_13 = arith.constant 0 : index
    %c0_14 = arith.constant 0 : index
    %18 = vector.load %arg6[%c0_13, %c0_14] : memref<8x128xf32, #tpu.memory_space<vmem>>, vector<8x128xf32>
    tpu.vector_store %arg6[%c0_13, %c0_14], %17 {strides = array<i32>} : memref<8x128xf32, #tpu.memory_space<vmem>>, vector<8x128xf32>,
    return
  }
  func.func @transform_0(%arg0: i32) -> (i32, i32) {
    %c0_i32 = arith.constant 0 : i32
    %c0_i32_0 = arith.constant 0 : i32
    return %arg0, %c0_i32 : i32, i32
  }
  func.func @transform_1(%arg0: i32) -> (i32, i32) {
    %c0_i32 = arith.constant 0 : i32
    %c0_i32_0 = arith.constant 0 : i32
    %c0_i32_1 = arith.constant 0 : i32
    return %c0_i32, %c0_i32_0 : i32, i32
  }
  func.func @transform_2(%arg0: i32) -> (i32, i32) {
    %c0_i32 = arith.constant 0 : i32
    %c0_i32_0 = arith.constant 0 : i32
    %c0_i32_1 = arith.constant 0 : i32
    return %c0_i32, %c0_i32_0 : i32, i32
  }
  func.func @transform_3(%arg0: i32) -> (i32, i32) {
    %c0_i32 = arith.constant 0 : i32
    %c0_i32_0 = arith.constant 0 : i32
    %c0_i32_1 = arith.constant 0 : i32
    return %c0_i32, %c0_i32_0 : i32, i32
  }
  func.func @transform_4(%arg0: i32) -> (i32, i32) {
    %c0_i32 = arith.constant 0 : i32
    %c0_i32_0 = arith.constant 0 : i32
    %c0_i32_1 = arith.constant 0 : i32
    return %c0_i32, %c0_i32_0 : i32, i32
  }
  func.func @transform_5(%arg0: i32) -> (i32, i32) {
    %c0_i32 = arith.constant 0 : i32
    %c0_i32_0 = arith.constant 0 : i32
    return %arg0, %c0_i32 : i32, i32
  }
}

</mosaic_0001>

<bundles_post_ra>
// kernel: tpu_custom_call.1
= control target key start
LH: loop header
LB: loop body
LE: loop exit
PB: predicated region body
PF: predicated region fallthrough
CT: control target
= control target key end

     0   :  { %10 = vsyncpa [#allocation3], 0  ;;  %s778_s0 = inlined_call_operand.hbm [shape: f32[8,8], index: 0, kind: input, shape index: {}]   ;;  %s779_s1 = inlined_call_operand.hbm [shape: f32[8,128], index: 1, kind: input, shape index: {}]   ;;  %s780_s2 = inlined_call_operand.hbm [shape: f32[128,128], index: 2, kind: input, shape index: {}]   ;;  %s781_s3 = inlined_call_operand.hbm [shape: f32[128,128], index: 3, kind: input, shape index: {}]   ;;  %s782_s4 = inlined_call_operand.vmem [shape: f32[3,128], index: 4, kind: input, shape index: {}]   ;;  %s783_s5 = inlined_call_operand.hbm [shape: f32[8,128], index: 5, kind: output, shape index: {}]  }
   0x1   :  { %11 = vsyncpa [#allocation6], 0 }
   0x2   :  { %12 = vsyncpa [#allocation9], 0 }
   0x3   :  { %13 = vsyncpa [#allocation4], 0  ;;  %s650_s18 = smov [#allocation5]   ;;  %s651_s20 = smov [#allocation2]  }
   0x4   :  { %s30_s19 = sshll.u32 %s650_s18, 4  ;;  %s20_s21 = sshll.u32 %s651_s20, 4  ;;  %s31_s19 = int_to_ptr.vmem [resolvable:$true] %s30_s19  ;;  %s21_s21 = int_to_ptr.vmem [resolvable:$true] %s20_s21 }
   0x5   :  { %s532_s24 = scalar_lea.hbm %s779_s1, 128 }
   0x6   :  { %p533_p0 = scmp.ne.s32.totalorder %s779_s1, %s532_s24  ;;  %p536_p1 = scmp.lt.u32.totalorder %s532_s24, %s779_s1 }
   0x8   :  { %p538_p2 = pnand %p536_p1, %p533_p0 }
   0xa   :  { %541 = shalt.err (!%p538_p2)
}
   0xb   :  { %s542_s29 = scalar_lea.vmem %s31_s19, 128  ;;  %p547_p4 = scmp.lt.s32.totalorder %s31_s19, %s31_s19 }
   0xc   :  { %p543_p3 = scmp.ne.s32.totalorder %s31_s19, %s542_s29  ;;  %p548_p5 = scmp.lt.s32.totalorder %s542_s29, %s542_s29 }
   0xe   :  { %p549_p6 = por %p548_p5, %p547_p4 }
  0x10   :  { %p550_p7 = pnand %p549_p6, %p543_p3 }
  0x12   :  { %553 = shalt.err (!%p550_p7)
}
  0x13   :  { %33 = dma.hbm_to_vmem [thread:$0]  %s779_s1, 128, %s31_s19, [#allocation6]  }
  0x14   :  { %s554_s9 = scalar_lea.hbm %s778_s0, 128 }
  0x15   :  { %p555_p8 = scmp.ne.s32.totalorder %s778_s0, %s554_s9  ;;  %p558_p9 = scmp.lt.u32.totalorder %s554_s9, %s778_s0 }
  0x17   :  { %p560_p10 = pnand %p558_p9, %p555_p8 }
  0x19   :  { %563 = shalt.err (!%p560_p10)
}
  0x1a   :  { %s564_s14 = scalar_lea.vmem %s21_s21, 128  ;;  %p569_p12 = scmp.lt.s32.totalorder %s21_s21, %s21_s21 }
  0x1b   :  { %p565_p11 = scmp.ne.s32.totalorder %s21_s21, %s564_s14  ;;  %p570_p13 = scmp.lt.s32.totalorder %s564_s14, %s564_s14 }
  0x1d   :  { %p571_p0 = por %p570_p13, %p569_p12 }
  0x1f   :  { %p572_p1 = pnand %p571_p0, %p565_p11 }
  0x21   :  { %575 = shalt.err (!%p572_p1)
}
  0x22   :  { %23 = dma.hbm_to_vmem [thread:$0]  %s778_s0, 128, %s21_s21, [#allocation3]  }
  0x23   :  { %s652_s16 = smov [#allocation7]   ;;  %s576_s20 = scalar_lea.hbm %s780_s2, 2048 }
  0x24   :  { %s39_s17 = sshll.u32 %s652_s16, 4  ;;  %p577_p2 = scmp.ne.s32.totalorder %s780_s2, %s576_s20  ;;  %s40_s17 = int_to_ptr.vmem [resolvable:$true] %s39_s17 }
  0x25   :  { %p580_p3 = scmp.lt.u32.totalorder %s576_s20, %s780_s2 }
  0x27   :  { %p582_p4 = pnand %p580_p3, %p577_p2 }
  0x29   :  { %585 = shalt.err (!%p582_p4)
}
  0x2a   :  { %s586_s26 = scalar_lea.vmem %s40_s17, 2048  ;;  %p591_p6 = scmp.lt.s32.totalorder %s40_s17, %s40_s17 }
  0x2b   :  { %p587_p5 = scmp.ne.s32.totalorder %s40_s17, %s586_s26  ;;  %p592_p7 = scmp.lt.s32.totalorder %s586_s26, %s586_s26 }
  0x2d   :  { %p593_p8 = por %p592_p7, %p591_p6 }
  0x2f   :  { %p594_p9 = pnand %p593_p8, %p587_p5 }
  0x31   :  { %597 = shalt.err (!%p594_p9)
}
  0x32   :  { %s653_s0 = smov 128   ;;  %s654_s21 = smov 8  }
  0x33   :  { %45 = dma.hbm_to_vmem [thread:$0]  %s780_s2, 2048, %s40_s17, [#allocation6], %s653_s0, %s653_s0, %s654_s21  }
  0x34   :  { %s655_s29 = smov [#allocation8]   ;;  %s598_s8 = scalar_lea.hbm %s781_s3, 2048 }
  0x35   :  { %s51_s30 = sshll.u32 %s655_s29, 4  ;;  %p599_p10 = scmp.ne.s32.totalorder %s781_s3, %s598_s8  ;;  %s52_s30 = int_to_ptr.vmem [resolvable:$true] %s51_s30 }
  0x36   :  { %p602_p11 = scmp.lt.u32.totalorder %s598_s8, %s781_s3 }
  0x38   :  { %p604_p12 = pnand %p602_p11, %p599_p10 }
  0x3a   :  { %607 = shalt.err (!%p604_p12)
}
  0x3b   :  { %s608_s13 = scalar_lea.vmem %s52_s30, 2048  ;;  %p613_p0 = scmp.lt.s32.totalorder %s52_s30, %s52_s30 }
  0x3c   :  { %p609_p13 = scmp.ne.s32.totalorder %s52_s30, %s608_s13  ;;  %p614_p1 = scmp.lt.s32.totalorder %s608_s13, %s608_s13 }
  0x3e   :  { %p615_p2 = por %p614_p1, %p613_p0 }
  0x40   :  { %p616_p3 = pnand %p615_p2, %p609_p13 }
  0x42   :  { %619 = shalt.err (!%p616_p3)
}
  0x43   :  { %57 = dma.hbm_to_vmem [thread:$0]  %s781_s3, 2048, %s52_s30, [#allocation9], %s653_s0, %s653_s0, %s654_s21  }
  0x44   :  { %642 = dma.done.wait [#allocation3], 128  }
  0x45   :  { %643 = vsyncadd [#allocation3], 4294967168 }
  0x46   :  { %644 = dma.done.wait [#allocation6], 2176  }
  0x47   :  { %645 = vsyncadd [#allocation6], 4294965120 }
  0x48   :  { %646 = dma.done.wait [#allocation9], 2048  }
  0x49   :  { %647 = vsyncadd [#allocation9], 4294965248  ;;  %v656_v0 = vmov 0.0   ;;  %vm657_vm0 = vmmov 0   ;;  %v658_v1 = vmov 0.0|0.0   ;;  %vm79_vm1 = vcmask 64512  }
  0x4a   :  { %395 = vmatprep.subr.mxu0 %v656_v0  ;;  %397 = vmatprep.mubr.msk.f32.mxu0 %vm657_vm0, %v656_v0  ;;  %v73_v2 = vld [vmem:[#allocation5] sm:$0xff]  ;;  %v72_v3 = vld [vmem:[#allocation2] sm:$0xff]  ;;  %v154_v4 = vld [vmem:[#allocation7] sm:$0xff]  ;;  %s659_s19 = smov [#allocation10]  }
  0x4b   :  { %470 = vmatprep.subr.bf16.mxu1 %v658_v1  ;;  %432 = vmatprep.mubr.msk.f32.mxu1 %vm657_vm0, %v656_v0  ;;  %v155_v5 = vld [vmem:[#allocation7 + $0x8] sm:$0xff]  ;;  %v156_v6 = vld [vmem:[#allocation7 + $0x10] sm:$0xff]  ;;  %v157_v7 = vld [vmem:[#allocation7 + $0x18] sm:$0xff]  ;;  %s344_s20 = sshll.u32 %s659_s19, 4  ;;  %s345_s20 = int_to_ptr.vmem [resolvable:$true] %s344_s20 }
  0x4c   :  { %396 = vmatpush3.msra.mxu0 %v73_v2  ;;  %v471_v8 = vpack.c.bf16 %v155_v5, %v154_v4  ;;  %v474_v9 = vpack.c.bf16 %v157_v7, %v156_v6  ;;  %v158_v10 = vld [vmem:[#allocation7 + $0x20] sm:$0xff]  ;;  %v159_v11 = vld [vmem:[#allocation7 + $0x28] sm:$0xff]  ;;  %v160_v13 = vld [vmem:[#allocation7 + $0x30] sm:$0xff]  ;;  %s620_s22 = scalar_lea.vmem %s345_s20, 128  ;;  %p625_p5 = scmp.lt.s32.totalorder %s345_s20, %s345_s20 }
  0x4d   :  { %398 = vmatmul.mubr.msk.f32.vlgmr.msra.gmra.mrb[0].mxu0 %vm79_vm1, %v72_v3  ;;  %494 = vmatprep.subr.bf16.mxu0 %v658_v1  ;;  %v477_v12 = vpack.c.bf16 %v159_v11, %v158_v10  ;;  %v161_v14 = vld [vmem:[#allocation7 + $0x38] sm:$0xff]  ;;  %v162_v16 = vld [vmem:[#allocation7 + $0x40] sm:$0xff]  ;;  %v163_v17 = vld [vmem:[#allocation7 + $0x48] sm:$0xff]  ;;  %p621_p4 = scmp.ne.s32.totalorder %s345_s20, %s620_s22  ;;  %p626_p6 = scmp.lt.s32.totalorder %s620_s22, %s620_s22 }
  0x4e   :  { %467 = vmatprep.mubr.msk.f32.mxu0 %vm657_vm0, %v656_v0  ;;  %472 = vmatpush3.bf16.msra.mxu1 %v471_v8  ;;  %v480_v15 = vpack.c.bf16 %v161_v14, %v160_v13  ;;  %v483_v18 = vpack.c.bf16 %v163_v17, %v162_v16  ;;  %v164_v19 = vld [vmem:[#allocation7 + $0x50] sm:$0xff]  ;;  %v165_v20 = vld [vmem:[#allocation7 + $0x58] sm:$0xff]  ;;  %v166_v22 = vld [vmem:[#allocation7 + $0x60] sm:$0xff] }
  0x4f   :  { %473 = vmatprep.subr.bf16.mxu1 %v658_v1  ;;  %v486_v21 = vpack.c.bf16 %v165_v20, %v164_v19  ;;  %v167_v23 = vld [vmem:[#allocation7 + $0x68] sm:$0xff]  ;;  %v168_v25 = vld [vmem:[#allocation7 + $0x70] sm:$0xff]  ;;  %v169_v26 = vld [vmem:[#allocation7 + $0x78] sm:$0xff]  ;;  %p627_p7 = por %p626_p6, %p625_p5 }
  0x50   :  { %v489_v24 = vpack.c.bf16 %v167_v23, %v166_v22  ;;  %v492_v27 = vpack.c.bf16 %v169_v26, %v168_v25  ;;  %v246_v28 = vld [vmem:[#allocation8] sm:$0xff]  ;;  %v247_v29 = vld [vmem:[#allocation8 + $0x8] sm:$0xff]  ;;  %v248_v30 = vld [vmem:[#allocation8 + $0x10] sm:$0xff] }
  0x51   :  { %v495_v31 = vpack.c.bf16 %v247_v29, %v246_v28  ;;  %v249_v32 = vld [vmem:[#allocation8 + $0x18] sm:$0xff]  ;;  %v250_v34 = vld [vmem:[#allocation8 + $0x20] sm:$0xff]  ;;  %v251_v35 = vld [vmem:[#allocation8 + $0x28] sm:$0xff]  ;;  %p628_p8 = pnand %p627_p7, %p621_p4 }
  0x52   :  { %475 = vmatpush3.bf16.msra.mxu1 %v474_v9  ;;  %v498_v33 = vpack.c.bf16 %v249_v32, %v248_v30  ;;  %v501_v36 = vpack.c.bf16 %v251_v35, %v250_v34  ;;  %v252_v37 = vld [vmem:[#allocation8 + $0x30] sm:$0xff]  ;;  %v253_v38 = vld [vmem:[#allocation8 + $0x38] sm:$0xff]  ;;  %v254_v40 = vld [vmem:[#allocation8 + $0x40] sm:$0xff] }
  0x53   :  { %476 = vmatprep.subr.bf16.mxu1 %v658_v1  ;;  %496 = vmatpush3.bf16.msra.mxu0 %v495_v31  ;;  %v504_v39 = vpack.c.bf16 %v253_v38, %v252_v37  ;;  %v255_v41 = vld [vmem:[#allocation8 + $0x48] sm:$0xff]  ;;  %v355_v43 = vld [vmem:[%s782_s4] ss:$0 sm:$0xff]  ;;  %v257_v49 = vld [vmem:[#allocation8 + $0x58] sm:$0xff] }
  0x54   :  { %497 = vmatprep.subr.bf16.mxu0 %v658_v1  ;;  %v507_v42 = vpack.c.bf16 %v255_v41, %v254_v40  ;;  %v256_v48 = vld [vmem:[#allocation8 + $0x50] sm:$0xff]  ;;  %v258_v51 = vld [vmem:[#allocation8 + $0x60] sm:$0xff]  ;;  %v259_v52 = vld [vmem:[#allocation8 + $0x68] sm:$0xff] }
  0x55   :  { %v510_v50 = vpack.c.bf16 %v257_v49, %v256_v48  ;;  %v513_v53 = vpack.c.bf16 %v259_v52, %v258_v51  ;;  %v260_v54 = vld [vmem:[#allocation8 + $0x70] sm:$0xff]  ;;  %v261_v55 = vld [vmem:[#allocation8 + $0x78] sm:$0xff] }
  0x56   :  { %478 = vmatpush3.bf16.msra.mxu1 %v477_v12  ;;  %v516_v56 = vpack.c.bf16 %v261_v55, %v260_v54  ;;  %v357_v57 = vld [vmem:[%s782_s4 + $0x1] ss:$0 sm:$0xff]  ;;  %v358_v62 = vld [vmem:[%s782_s4 + $0x2] ss:$0 sm:$0xff] }
  0x57   :  { %479 = vmatprep.subr.bf16.mxu1 %v658_v1  ;;  %499 = vmatpush3.bf16.msra.mxu0 %v498_v33 }
  0x58   :  { %500 = vmatprep.subr.bf16.mxu0 %v658_v1 }
  0x5a   :  { %481 = vmatpush3.bf16.msra.mxu1 %v480_v15 }
  0x5b   :  { %482 = vmatprep.subr.bf16.mxu1 %v658_v1  ;;  %502 = vmatpush3.bf16.msra.mxu0 %v501_v36 }
  0x5c   :  { %503 = vmatprep.subr.bf16.mxu0 %v658_v1 }
  0x5e   :  { %484 = vmatpush3.bf16.msra.mxu1 %v483_v18 }
  0x5f   :  { %485 = vmatprep.subr.bf16.mxu1 %v658_v1  ;;  %505 = vmatpush3.bf16.msra.mxu0 %v504_v39 }
  0x60   :  { %506 = vmatprep.subr.bf16.mxu0 %v658_v1 }
  0x62   :  { %487 = vmatpush3.bf16.msra.mxu1 %v486_v21 }
  0x63   :  { %488 = vmatprep.subr.bf16.mxu1 %v658_v1  ;;  %508 = vmatpush3.bf16.msra.mxu0 %v507_v42 }
  0x64   :  { %509 = vmatprep.subr.bf16.mxu0 %v658_v1 }
  0x66   :  { %490 = vmatpush3.bf16.msra.mxu1 %v489_v24 }
  0x67   :  { %491 = vmatprep.subr.bf16.mxu1 %v658_v1  ;;  %511 = vmatpush3.bf16.msra.mxu0 %v510_v50 }
  0x68   :  { %512 = vmatprep.subr.bf16.mxu0 %v658_v1 }
  0x6a   :  { %493 = vmatpush3.bf16.msra.mxu1 %v492_v27 }
  0x6b   :  { %514 = vmatpush3.bf16.msra.mxu0 %v513_v53 }
  0x6c   :  { %515 = vmatprep.subr.bf16.mxu0 %v658_v1 }
  0x6f   :  { %517 = vmatpush3.bf16.msra.mxu0 %v516_v56 }
 0x120   :  { %v149_v44 = vpop.f32.mrb[0].mxu0 }
 0x121   :  { %v150_v45 = vadd.f32 %v355_v43, %v149_v44  ;;  %v399_v46 = vpop.f32.mrb[1].mxu0 }
 0x123   :  { %528 = vtanh.f32 %v150_v45 }
 0x12d   :  { %v529_v47 = vpop.eup %528 }
 0x12e   :  { %433 = vmatmul.mubr.f32.vlgmr.msra.gmra.mrb[0].mxu1 %v529_v47 }
 0x201   :  { %v241_v58 = vpop.f32.mrb[0].mxu1 }
 0x202   :  { %v242_v59 = vadd.f32 %v357_v57, %v241_v58  ;;  %v434_v60 = vpop.f32.mrb[1].mxu1 }
 0x204   :  { %530 = vtanh.f32 %v242_v59 }
 0x20e   :  { %v531_v61 = vpop.eup %530 }
 0x20f   :  { %468 = vmatmul.mubr.f32.vlgmr.msra.gmra.mrb[2].mxu0 %v531_v61 }
 0x2e2   :  { %v333_v63 = vpop.f32.mrb[2].mxu0 }
 0x2e3   :  { %v334_v0 = vadd.f32 %v358_v62, %v333_v63  ;;  %v469_v1 = vpop.f32.mrb[3].mxu0 }
 0x2e5   :  { %337 = vst [vmem:[#allocation10] sm:$0xff] %v334_v0 }
 0x2e6   :  { %631 = shalt.err (!%p628_p8)
}
 0x2e7   :  { %s632_s25 = scalar_lea.hbm %s783_s5, 128 }
 0x2e8   :  { %p633_p9 = scmp.ne.s32.totalorder %s783_s5, %s632_s25  ;;  %p636_p10 = scmp.lt.u32.totalorder %s632_s25, %s783_s5 }
 0x2ea   :  { %p638_p11 = pnand %p636_p10, %p633_p9 }
 0x2ec   :  { %641 = shalt.err (!%p638_p11)
}
 0x2ed   :  { %347 = dma.vmem_to_hbm [thread:$0]  %s345_s20, 128, %s783_s5, [#allocation4]  }
 0x2ee   :  { %648 = dma.done.wait [#allocation4], 128  }
 0x2ef   :  { %649 = vsyncadd [#allocation4], 4294967168 }
 0x2f0   :  { %351 = vsyncpa [#allocation3], 1 }
 0x2f1   :  { %352 = vsyncpa [#allocation6], 1 }
 0x2f2   :  { %353 = vsyncpa [#allocation9], 1 }
 0x2f3   :  { %354 = vsyncpa [#allocation4], 1 }

</bundles_post_ra>
